<compile_context>
chip_gen: v7x
topology: tpu7x:2x2x1
jax: 0.10.0
libtpu: 0.0.40
codegen_flags: <defaults>
</compile_context>

<pallas_src>
import jax
import jax.numpy as jnp
import numpy as np
from jax.experimental import pallas as pl
from jax.experimental.pallas import tpu as pltpu


# ----------------------------- Pallas kernel --------------------------------
def co_lstm_kernel(x_ref, wih_ref, whh_ref, b_ref, fcw_ref, fcb_ref,
                   h0_ref, c0_ref, out_ref):
    """Fused Co_LSTM forward for one batch tile.

    Prepared layouts (see _prep_fused_params):
      wih : (D, 8H)  input->gate weights of BOTH LSTMs (W folded into LSTM2),
                     columns ordered [i1 i2 | f1 f2 | o1 o2 | g1 g2]
      whh : (2H, 8H) block-diagonal recurrent weights, same column order
      b   : (1, 8H)  b_ih + b_hh of both LSTMs, same column order
      h0/c0 : (Bt, 2H) = [h1 | h2], [c1 | c2]
    """
    x = x_ref[...]                           # (Bt, T, D) f32
    T = x.shape[1]
    whh = whh_ref[...]                       # (2H, 8H)
    H2 = whh.shape[0]                        # 2H = width of one fused gate block

    # One MXU pass for all timesteps / both LSTMs / all four gates; bias added once.
    gx = (jnp.einsum("btd,dg->btg", x, wih_ref[...],
                     preferred_element_type=jnp.float32)
          + b_ref[...])                      # (Bt, T, 8H)

    h = h0_ref[...]                          # (Bt, 2H)
    c = c0_ref[...]                          # (Bt, 2H)

    # Small static trip count (seq_len = 7) -> static unroll is fine.
    # TODO(synk): switch to lax.fori_loop over a VMEM-resident gx if T grows past ~16.
    for t in range(T):
        gates = gx[:, t, :] + jnp.dot(h, whh,
                                      preferred_element_type=jnp.float32)  # (Bt, 8H)
        sg = jax.nn.sigmoid(gates[:, :3 * H2])   # contiguous [i | f | o] block
        g = jnp.tanh(gates[:, 3 * H2:])          # [g1 g2]
        i = sg[:, 0:H2]
        f = sg[:, H2:2 * H2]
        o = sg[:, 2 * H2:3 * H2]
        c = f * c + i * g
        h = o * jnp.tanh(c)

    out_ref[...] = (jnp.dot(h, fcw_ref[...], preferred_element_type=jnp.float32)
                    + fcb_ref[...])


# ---------------------- weight prep (algebraic fusion) ------------------------
def _prep_fused_params(params):
    """Fold x@W into LSTM2's input weights, reorder gates (i,f,g,o)->(i,f,o,g),
    and interleave the two LSTMs' gate columns so the kernel runs one
    block-diagonal recurrence with layout [i1 i2 | f1 f2 | o1 o2 | g1 g2]."""
    H = params["whh1"].shape[0]

    def reorder(w):                        # columns (i,f,g,o) -> (i,f,o,g)
        return jnp.concatenate(
            [w[:, 0:H], w[:, H:2 * H], w[:, 3 * H:4 * H], w[:, 2 * H:3 * H]],
            axis=1)

    def fuse(a, b):                        # (R,4H),(R,4H) -> (R,8H), interleaved per gate
        R = a.shape[0]
        return jnp.stack([a.reshape(R, 4, H), b.reshape(R, 4, H)],
                         axis=2).reshape(R, 8 * H)

    wih1 = reorder(params["wih1"])                           # (D, 4H)
    wih2_eff = reorder(params["W"] @ params["wih2"])         # (x@W)@wih2 == x@(W@wih2)
    wih_f = fuse(wih1, wih2_eff)                             # (D, 8H)

    z = jnp.zeros((H, 4 * H), jnp.float32)
    whh1p = jnp.concatenate([reorder(params["whh1"]), z], axis=0)   # (2H, 4H)
    whh2p = jnp.concatenate([z, reorder(params["whh2"])], axis=0)   # (2H, 4H)
    whh_f = fuse(whh1p, whh2p)             # (2H, 8H), exact zeros off the diagonal blocks

    b_f = fuse(reorder(params["b1"]), reorder(params["b2"]))        # (1, 8H)
    return wih_f, whh_f, b_f


# ------------------------------- wrapper -------------------------------------
@jax.jit
def co_lstm_forward(x, params, h10, c10, h20, c20):
    B, T, D = x.shape
    H = params["whh1"].shape[0]
    out_dim = params["fc_w"].shape[1]

    wih_f, whh_f, b_f = _prep_fused_params(params)
    h0 = jnp.concatenate([h10, h20], axis=1)     # (B, 2H) = [h1 | h2]
    c0 = jnp.concatenate([c10, c20], axis=1)

    # Batch grid: single tile at small B; sublane-aligned tiles once B grows.
    b_tile = B if B <= 256 else 256
    assert B % b_tile == 0, "batch must tile evenly"
    grid = (B // b_tile,)

    def wspec(shape):
        return pl.BlockSpec(shape, lambda b: (0,) * len(shape))

    return pl.pallas_call(
        co_lstm_kernel,
        out_shape=jax.ShapeDtypeStruct((B, out_dim), jnp.float32),
        grid=grid,
        in_specs=[
            pl.BlockSpec((b_tile, T, D), lambda b: (b, 0, 0)),       # x
            wspec((D, 8 * H)),                                       # fused wih
            wspec((2 * H, 8 * H)),                                   # fused block-diag whh
            wspec((1, 8 * H)),                                       # fused bias
            wspec((2 * H, out_dim)),                                 # fc weight
            wspec((1, out_dim)),                                     # fc bias
            pl.BlockSpec((b_tile, 2 * H), lambda b: (b, 0)),         # h0
            pl.BlockSpec((b_tile, 2 * H), lambda b: (b, 0)),         # c0
        ],
        out_specs=pl.BlockSpec((b_tile, out_dim), lambda b: (b, 0)),
        compiler_params=pltpu.CompilerParams(
            dimension_semantics=("parallel",),
            vmem_limit_bytes=32 * 1024 * 1024),
    )(x, wih_f, whh_f, b_f, params["fc_w"], params["fc_b"], h0, c0)


# --------------------------- plain-JAX reference ------------------------------
def co_lstm_reference(x, params, h10, c10, h20, c20):
    B, T, D = x.shape

    def run_lstm(x_seq, wih, whh, b, h, c):
        H = h.shape[-1]
        for t in range(T):
            gates = x_seq[:, t, :] @ wih + h @ whh + b
            i = jax.nn.sigmoid(gates[:, 0 * H:1 * H])
            f = jax.nn.sigmoid(gates[:, 1 * H:2 * H])
            g = jnp.tanh(gates[:, 2 * H:3 * H])
            o = jax.nn.sigmoid(gates[:, 3 * H:4 * H])
            c = f * c + i * g
            h = o * jnp.tanh(c)
        return h

    xw = jnp.einsum("btd,de->bte", x, params["W"])
    h1 = run_lstm(x, params["wih1"], params["whh1"], params["b1"], h10, c10)
    h2 = run_lstm(xw, params["wih2"], params["whh2"], params["b2"], h20, c20)
    cat = jnp.concatenate([h1, h2], axis=1)
    return cat @ params["fc_w"] + params["fc_b"]


# ----------------------------- param init ------------------------------------
def init_params(key, input_dim, hidden_dim, output_dim):
    ks = jax.random.split(key, 12)
    H = hidden_dim
    s_lstm = 1.0 / np.sqrt(H)                 # PyTorch LSTM default: U(-1/sqrt(H), 1/sqrt(H))
    s_fc = 1.0 / np.sqrt(2 * H)               # PyTorch Linear default

    def u(k, shape, s):
        return jax.random.uniform(k, shape, jnp.float32, -s, s)

    params = {
        "W": jax.random.normal(ks[0], (input_dim, input_dim), jnp.float32),
        # stored transposed: (in, 4H), gate column order i,f,g,o (PyTorch)
        "wih1": u(ks[1], (input_dim, 4 * H), s_lstm),
        "whh1": u(ks[2], (H, 4 * H), s_lstm),
        "b1": u(ks[3], (1, 4 * H), s_lstm) + u(ks[4], (1, 4 * H), s_lstm),  # b_ih + b_hh
        "wih2": u(ks[5], (input_dim, 4 * H), s_lstm),
        "whh2": u(ks[6], (H, 4 * H), s_lstm),
        "b2": u(ks[7], (1, 4 * H), s_lstm) + u(ks[8], (1, 4 * H), s_lstm),
        "fc_w": u(ks[9], (2 * H, output_dim), s_fc),
        "fc_b": u(ks[10], (1, output_dim), s_fc),
    }
    return params


# --------------------------------- main ---------------------------------------
if __name__ == "__main__":
    # small shapes consistent with the module (batch_first LSTM, seq_len=7)
    batch_size = 2
    seq_len = 7
    input_dim = 16
    hidden_dim = 8
    output_dim = 1

    key = jax.random.PRNGKey(0)
    k_x, k_p, k_h = jax.random.split(key, 3)

    x = jax.random.normal(k_x, (batch_size, seq_len, input_dim), jnp.float32)
    params = init_params(k_p, input_dim, hidden_dim, output_dim)

    # init_hidden(): torch.rand -> deterministic U[0,1) draws here
    kh = jax.random.split(k_h, 4)
    h10 = jax.random.uniform(kh[0], (batch_size, hidden_dim), jnp.float32)
    c10 = jax.random.uniform(kh[1], (batch_size, hidden_dim), jnp.float32)
    h20 = jax.random.uniform(kh[2], (batch_size, hidden_dim), jnp.float32)
    c20 = jax.random.uniform(kh[3], (batch_size, hidden_dim), jnp.float32)

    out = co_lstm_forward(x, params, h10, c10, h20, c20)
    out = jax.block_until_ready(out)

    ref = co_lstm_reference(x, params, h10, c10, h20, c20)
    assert out.shape == (batch_size, output_dim)
    np.testing.assert_allclose(np.asarray(out), np.asarray(ref),
                               rtol=1e-4, atol=1e-4)

    print("KERNEL_OK")
</pallas_src>

<mosaic_0001>
module attributes {stable_mosaic.version = 11 : i64} {
  func.func @co_lstm_kernel(%arg0: i32, %arg1: memref<2x7x16xf32, #tpu.memory_space<vmem>>, %arg2: memref<16x64xf32, #tpu.memory_space<vmem>>, %arg3: memref<16x64xf32, #tpu.memory_space<vmem>>, %arg4: memref<1x64xf32, #tpu.memory_space<vmem>>, %arg5: memref<16x1xf32, #tpu.memory_space<vmem>>, %arg6: memref<1x1xf32, #tpu.memory_space<vmem>>, %arg7: memref<2x16xf32, #tpu.memory_space<vmem>>, %arg8: memref<2x16xf32, #tpu.memory_space<vmem>>, %arg9: memref<2x1xf32, #tpu.memory_space<vmem>>) attributes {dimension_semantics = [#tpu.dimension_semantics<parallel>], iteration_bounds = array<i64: 1>, scalar_prefetch = 0 : i64, scratch_operands = 0 : i64, tpu.core_type = #tpu.core_type<tc>, window_params = [{transform_indices = @transform_0, window_bounds = array<i64: 2, 7, 16>}, {pipeline_mode = #tpu.pipeline_mode<synchronous>, transform_indices = @transform_1, window_bounds = array<i64: 16, 64>}, {pipeline_mode = #tpu.pipeline_mode<synchronous>, transform_indices = @transform_2, window_bounds = array<i64: 16, 64>}, {pipeline_mode = #tpu.pipeline_mode<synchronous>, transform_indices = @transform_3, window_bounds = array<i64: 1, 64>}, {pipeline_mode = #tpu.pipeline_mode<synchronous>, transform_indices = @transform_4, window_bounds = array<i64: 16, 1>}, {pipeline_mode = #tpu.pipeline_mode<synchronous>, transform_indices = @transform_5, window_bounds = array<i64: 1, 1>}, {transform_indices = @transform_6, window_bounds = array<i64: 2, 16>}, {transform_indices = @transform_7, window_bounds = array<i64: 2, 16>}, {transform_indices = @transform_8, window_bounds = array<i64: 2, 1>}]} {
    %c0 = arith.constant 0 : index
    %c0_0 = arith.constant 0 : index
    %c0_1 = arith.constant 0 : index
    %0 = vector.load %arg1[%c0, %c0_0, %c0_1] : memref<2x7x16xf32, #tpu.memory_space<vmem>>, vector<2x7x16xf32>
    %c0_2 = arith.constant 0 : index
    %c0_3 = arith.constant 0 : index
    %1 = vector.load %arg3[%c0_2, %c0_3] : memref<16x64xf32, #tpu.memory_space<vmem>>, vector<16x64xf32>
    %c0_4 = arith.constant 0 : index
    %c0_5 = arith.constant 0 : index
    %2 = vector.load %arg2[%c0_4, %c0_5] : memref<16x64xf32, #tpu.memory_space<vmem>>, vector<16x64xf32>
    "tpu.trace_start"() <{level = 10 : i32, message = "btd,dg->btg"}> : () -> ()
    %cst = arith.constant dense<0.000000e+00> : vector<2x7x64xf32>
    %3 = tpu.matmul %0, %2, %cst {dimension_numbers = #tpu.dot_dimension_numbers<[2], [0], [0, 1], [1], [0, 0, 0, 1, 1, 1], [], []>} : vector<2x7x16xf32>, vector<16x64xf32>, vector<2x7x64xf32> -> vector<2x7x64xf32>
    "tpu.trace_stop"() : () -> ()
    %c0_6 = arith.constant 0 : index
    %c0_7 = arith.constant 0 : index
    %4 = vector.load %arg4[%c0_6, %c0_7] : memref<1x64xf32, #tpu.memory_space<vmem>>, vector<1x64xf32>
    %5 = vector.shape_cast %4 : vector<1x64xf32> to vector<1x1x64xf32>
    %6 = vector.broadcast %5 : vector<1x1x64xf32> to vector<2x7x64xf32>
    %7 = arith.addf %3, %6 : vector<2x7x64xf32>
    %c0_8 = arith.constant 0 : index
    %c0_9 = arith.constant 0 : index
    %8 = vector.load %arg7[%c0_8, %c0_9] : memref<2x16xf32, #tpu.memory_space<vmem>>, vector<2x16xf32>
    %c0_10 = arith.constant 0 : index
    %c0_11 = arith.constant 0 : index
    %9 = vector.load %arg8[%c0_10, %c0_11] : memref<2x16xf32, #tpu.memory_space<vmem>>, vector<2x16xf32>
    %10 = vector.extract_strided_slice %7 {offsets = [0, 0, 0], sizes = [2, 1, 64], strides = [1, 1, 1]} : vector<2x7x64xf32> to vector<2x1x64xf32>
    %11 = vector.shape_cast %10 : vector<2x1x64xf32> to vector<2x64xf32>
    %cst_12 = arith.constant dense<0.000000e+00> : vector<2x64xf32>
    %12 = tpu.matmul %8, %1, %cst_12 {dimension_numbers = #tpu.dot_dimension_numbers<[1], [0], [0], [1], [0, 0, 1, 1], [], []>} : vector<2x16xf32>, vector<16x64xf32>, vector<2x64xf32> -> vector<2x64xf32>
    %13 = arith.addf %11, %12 : vector<2x64xf32>
    %14 = vector.extract_strided_slice %13 {offsets = [0, 0], sizes = [2, 48], strides = [1, 1]} : vector<2x64xf32> to vector<2x48xf32>
    %15 = arith.negf %14 : vector<2x48xf32>
    %16 = math.exp %15 : vector<2x48xf32>
    %cst_13 = arith.constant 1.000000e+00 : f32
    %17 = vector.broadcast %cst_13 : f32 to vector<2x48xf32>
    %18 = arith.addf %17, %16 : vector<2x48xf32>
    %19 = arith.divf %17, %18 : vector<2x48xf32>
    %20 = vector.extract_strided_slice %13 {offsets = [0, 48], sizes = [2, 16], strides = [1, 1]} : vector<2x64xf32> to vector<2x16xf32>
    %21 = math.tanh %20 : vector<2x16xf32>
    %22 = vector.extract_strided_slice %19 {offsets = [0, 0], sizes = [2, 16], strides = [1, 1]} : vector<2x48xf32> to vector<2x16xf32>
    %23 = vector.extract_strided_slice %19 {offsets = [0, 16], sizes = [2, 16], strides = [1, 1]} : vector<2x48xf32> to vector<2x16xf32>
    %24 = vector.extract_strided_slice %19 {offsets = [0, 32], sizes = [2, 16], strides = [1, 1]} : vector<2x48xf32> to vector<2x16xf32>
    %25 = arith.mulf %23, %9 : vector<2x16xf32>
    %26 = arith.mulf %22, %21 : vector<2x16xf32>
    %27 = arith.addf %25, %26 : vector<2x16xf32>
    %28 = math.tanh %27 : vector<2x16xf32>
    %29 = arith.mulf %24, %28 : vector<2x16xf32>
    %30 = vector.extract_strided_slice %7 {offsets = [0, 1, 0], sizes = [2, 1, 64], strides = [1, 1, 1]} : vector<2x7x64xf32> to vector<2x1x64xf32>
    %31 = vector.shape_cast %30 : vector<2x1x64xf32> to vector<2x64xf32>
    %cst_14 = arith.constant dense<0.000000e+00> : vector<2x64xf32>
    %32 = tpu.matmul %29, %1, %cst_14 {dimension_numbers = #tpu.dot_dimension_numbers<[1], [0], [0], [1], [0, 0, 1, 1], [], []>} : vector<2x16xf32>, vector<16x64xf32>, vector<2x64xf32> -> vector<2x64xf32>
    %33 = arith.addf %31, %32 : vector<2x64xf32>
    %34 = vector.extract_strided_slice %33 {offsets = [0, 0], sizes = [2, 48], strides = [1, 1]} : vector<2x64xf32> to vector<2x48xf32>
    %35 = arith.negf %34 : vector<2x48xf32>
    %36 = math.exp %35 : vector<2x48xf32>
    %cst_15 = arith.constant 1.000000e+00 : f32
    %37 = vector.broadcast %cst_15 : f32 to vector<2x48xf32>
    %38 = arith.addf %37, %36 : vector<2x48xf32>
    %39 = arith.divf %37, %38 : vector<2x48xf32>
    %40 = vector.extract_strided_slice %33 {offsets = [0, 48], sizes = [2, 16], strides = [1, 1]} : vector<2x64xf32> to vector<2x16xf32>
    %41 = math.tanh %40 : vector<2x16xf32>
    %42 = vector.extract_strided_slice %39 {offsets = [0, 0], sizes = [2, 16], strides = [1, 1]} : vector<2x48xf32> to vector<2x16xf32>
    %43 = vector.extract_strided_slice %39 {offsets = [0, 16], sizes = [2, 16], strides = [1, 1]} : vector<2x48xf32> to vector<2x16xf32>
    %44 = vector.extract_strided_slice %39 {offsets = [0, 32], sizes = [2, 16], strides = [1, 1]} : vector<2x48xf32> to vector<2x16xf32>
    %45 = arith.mulf %43, %27 : vector<2x16xf32>
    %46 = arith.mulf %42, %41 : vector<2x16xf32>
    %47 = arith.addf %45, %46 : vector<2x16xf32>
    %48 = math.tanh %47 : vector<2x16xf32>
    %49 = arith.mulf %44, %48 : vector<2x16xf32>
    %50 = vector.extract_strided_slice %7 {offsets = [0, 2, 0], sizes = [2, 1, 64], strides = [1, 1, 1]} : vector<2x7x64xf32> to vector<2x1x64xf32>
    %51 = vector.shape_cast %50 : vector<2x1x64xf32> to vector<2x64xf32>
    %cst_16 = arith.constant dense<0.000000e+00> : vector<2x64xf32>
    %52 = tpu.matmul %49, %1, %cst_16 {dimension_numbers = #tpu.dot_dimension_numbers<[1], [0], [0], [1], [0, 0, 1, 1], [], []>} : vector<2x16xf32>, vector<16x64xf32>, vector<2x64xf32> -> vector<2x64xf32>
    %53 = arith.addf %51, %52 : vector<2x64xf32>
    %54 = vector.extract_strided_slice %53 {offsets = [0, 0], sizes = [2, 48], strides = [1, 1]} : vector<2x64xf32> to vector<2x48xf32>
    %55 = arith.negf %54 : vector<2x48xf32>
    %56 = math.exp %55 : vector<2x48xf32>
    %cst_17 = arith.constant 1.000000e+00 : f32
    %57 = vector.broadcast %cst_17 : f32 to vector<2x48xf32>
    %58 = arith.addf %57, %56 : vector<2x48xf32>
    %59 = arith.divf %57, %58 : vector<2x48xf32>
    %60 = vector.extract_strided_slice %53 {offsets = [0, 48], sizes = [2, 16], strides = [1, 1]} : vector<2x64xf32> to vector<2x16xf32>
    %61 = math.tanh %60 : vector<2x16xf32>
    %62 = vector.extract_strided_slice %59 {offsets = [0, 0], sizes = [2, 16], strides = [1, 1]} : vector<2x48xf32> to vector<2x16xf32>
    %63 = vector.extract_strided_slice %59 {offsets = [0, 16], sizes = [2, 16], strides = [1, 1]} : vector<2x48xf32> to vector<2x16xf32>
    %64 = vector.extract_strided_slice %59 {offsets = [0, 32], sizes = [2, 16], strides = [1, 1]} : vector<2x48xf32> to vector<2x16xf32>
    %65 = arith.mulf %63, %47 : vector<2x16xf32>
    %66 = arith.mulf %62, %61 : vector<2x16xf32>
    %67 = arith.addf %65, %66 : vector<2x16xf32>
    %68 = math.tanh %67 : vector<2x16xf32>
    %69 = arith.mulf %64, %68 : vector<2x16xf32>
    %70 = vector.extract_strided_slice %7 {offsets = [0, 3, 0], sizes = [2, 1, 64], strides = [1, 1, 1]} : vector<2x7x64xf32> to vector<2x1x64xf32>
    %71 = vector.shape_cast %70 : vector<2x1x64xf32> to vector<2x64xf32>
    %cst_18 = arith.constant dense<0.000000e+00> : vector<2x64xf32>
    %72 = tpu.matmul %69, %1, %cst_18 {dimension_numbers = #tpu.dot_dimension_numbers<[1], [0], [0], [1], [0, 0, 1, 1], [], []>} : vector<2x16xf32>, vector<16x64xf32>, vector<2x64xf32> -> vector<2x64xf32>
    %73 = arith.addf %71, %72 : vector<2x64xf32>
    %74 = vector.extract_strided_slice %73 {offsets = [0, 0], sizes = [2, 48], strides = [1, 1]} : vector<2x64xf32> to vector<2x48xf32>
    %75 = arith.negf %74 : vector<2x48xf32>
    %76 = math.exp %75 : vector<2x48xf32>
    %cst_19 = arith.constant 1.000000e+00 : f32
    %77 = vector.broadcast %cst_19 : f32 to vector<2x48xf32>
    %78 = arith.addf %77, %76 : vector<2x48xf32>
    %79 = arith.divf %77, %78 : vector<2x48xf32>
    %80 = vector.extract_strided_slice %73 {offsets = [0, 48], sizes = [2, 16], strides = [1, 1]} : vector<2x64xf32> to vector<2x16xf32>
    %81 = math.tanh %80 : vector<2x16xf32>
    %82 = vector.extract_strided_slice %79 {offsets = [0, 0], sizes = [2, 16], strides = [1, 1]} : vector<2x48xf32> to vector<2x16xf32>
    %83 = vector.extract_strided_slice %79 {offsets = [0, 16], sizes = [2, 16], strides = [1, 1]} : vector<2x48xf32> to vector<2x16xf32>
    %84 = vector.extract_strided_slice %79 {offsets = [0, 32], sizes = [2, 16], strides = [1, 1]} : vector<2x48xf32> to vector<2x16xf32>
    %85 = arith.mulf %83, %67 : vector<2x16xf32>
    %86 = arith.mulf %82, %81 : vector<2x16xf32>
    %87 = arith.addf %85, %86 : vector<2x16xf32>
    %88 = math.tanh %87 : vector<2x16xf32>
    %89 = arith.mulf %84, %88 : vector<2x16xf32>
    %90 = vector.extract_strided_slice %7 {offsets = [0, 4, 0], sizes = [2, 1, 64], strides = [1, 1, 1]} : vector<2x7x64xf32> to vector<2x1x64xf32>
    %91 = vector.shape_cast %90 : vector<2x1x64xf32> to vector<2x64xf32>
    %cst_20 = arith.constant dense<0.000000e+00> : vector<2x64xf32>
    %92 = tpu.matmul %89, %1, %cst_20 {dimension_numbers = #tpu.dot_dimension_numbers<[1], [0], [0], [1], [0, 0, 1, 1], [], []>} : vector<2x16xf32>, vector<16x64xf32>, vector<2x64xf32> -> vector<2x64xf32>
    %93 = arith.addf %91, %92 : vector<2x64xf32>
    %94 = vector.extract_strided_slice %93 {offsets = [0, 0], sizes = [2, 48], strides = [1, 1]} : vector<2x64xf32> to vector<2x48xf32>
    %95 = arith.negf %94 : vector<2x48xf32>
    %96 = math.exp %95 : vector<2x48xf32>
    %cst_21 = arith.constant 1.000000e+00 : f32
    %97 = vector.broadcast %cst_21 : f32 to vector<2x48xf32>
    %98 = arith.addf %97, %96 : vector<2x48xf32>
    %99 = arith.divf %97, %98 : vector<2x48xf32>
    %100 = vector.extract_strided_slice %93 {offsets = [0, 48], sizes = [2, 16], strides = [1, 1]} : vector<2x64xf32> to vector<2x16xf32>
    %101 = math.tanh %100 : vector<2x16xf32>
    %102 = vector.extract_strided_slice %99 {offsets = [0, 0], sizes = [2, 16], strides = [1, 1]} : vector<2x48xf32> to vector<2x16xf32>
    %103 = vector.extract_strided_slice %99 {offsets = [0, 16], sizes = [2, 16], strides = [1, 1]} : vector<2x48xf32> to vector<2x16xf32>
    %104 = vector.extract_strided_slice %99 {offsets = [0, 32], sizes = [2, 16], strides = [1, 1]} : vector<2x48xf32> to vector<2x16xf32>
    %105 = arith.mulf %103, %87 : vector<2x16xf32>
    %106 = arith.mulf %102, %101 : vector<2x16xf32>
    %107 = arith.addf %105, %106 : vector<2x16xf32>
    %108 = math.tanh %107 : vector<2x16xf32>
    %109 = arith.mulf %104, %108 : vector<2x16xf32>
    %110 = vector.extract_strided_slice %7 {offsets = [0, 5, 0], sizes = [2, 1, 64], strides = [1, 1, 1]} : vector<2x7x64xf32> to vector<2x1x64xf32>
    %111 = vector.shape_cast %110 : vector<2x1x64xf32> to vector<2x64xf32>
    %cst_22 = arith.constant dense<0.000000e+00> : vector<2x64xf32>
    %112 = tpu.matmul %109, %1, %cst_22 {dimension_numbers = #tpu.dot_dimension_numbers<[1], [0], [0], [1], [0, 0, 1, 1], [], []>} : vector<2x16xf32>, vector<16x64xf32>, vector<2x64xf32> -> vector<2x64xf32>
    %113 = arith.addf %111, %112 : vector<2x64xf32>
    %114 = vector.extract_strided_slice %113 {offsets = [0, 0], sizes = [2, 48], strides = [1, 1]} : vector<2x64xf32> to vector<2x48xf32>
    %115 = arith.negf %114 : vector<2x48xf32>
    %116 = math.exp %115 : vector<2x48xf32>
    %cst_23 = arith.constant 1.000000e+00 : f32
    %117 = vector.broadcast %cst_23 : f32 to vector<2x48xf32>
    %118 = arith.addf %117, %116 : vector<2x48xf32>
    %119 = arith.divf %117, %118 : vector<2x48xf32>
    %120 = vector.extract_strided_slice %113 {offsets = [0, 48], sizes = [2, 16], strides = [1, 1]} : vector<2x64xf32> to vector<2x16xf32>
    %121 = math.tanh %120 : vector<2x16xf32>
    %122 = vector.extract_strided_slice %119 {offsets = [0, 0], sizes = [2, 16], strides = [1, 1]} : vector<2x48xf32> to vector<2x16xf32>
    %123 = vector.extract_strided_slice %119 {offsets = [0, 16], sizes = [2, 16], strides = [1, 1]} : vector<2x48xf32> to vector<2x16xf32>
    %124 = vector.extract_strided_slice %119 {offsets = [0, 32], sizes = [2, 16], strides = [1, 1]} : vector<2x48xf32> to vector<2x16xf32>
    %125 = arith.mulf %123, %107 : vector<2x16xf32>
    %126 = arith.mulf %122, %121 : vector<2x16xf32>
    %127 = arith.addf %125, %126 : vector<2x16xf32>
    %128 = math.tanh %127 : vector<2x16xf32>
    %129 = arith.mulf %124, %128 : vector<2x16xf32>
    %130 = vector.extract_strided_slice %7 {offsets = [0, 6, 0], sizes = [2, 1, 64], strides = [1, 1, 1]} : vector<2x7x64xf32> to vector<2x1x64xf32>
    %131 = vector.shape_cast %130 : vector<2x1x64xf32> to vector<2x64xf32>
    %cst_24 = arith.constant dense<0.000000e+00> : vector<2x64xf32>
    %132 = tpu.matmul %129, %1, %cst_24 {dimension_numbers = #tpu.dot_dimension_numbers<[1], [0], [0], [1], [0, 0, 1, 1], [], []>} : vector<2x16xf32>, vector<16x64xf32>, vector<2x64xf32> -> vector<2x64xf32>
    %133 = arith.addf %131, %132 : vector<2x64xf32>
    %134 = vector.extract_strided_slice %133 {offsets = [0, 0], sizes = [2, 48], strides = [1, 1]} : vector<2x64xf32> to vector<2x48xf32>
    %135 = arith.negf %134 : vector<2x48xf32>
    %136 = math.exp %135 : vector<2x48xf32>
    %cst_25 = arith.constant 1.000000e+00 : f32
    %137 = vector.broadcast %cst_25 : f32 to vector<2x48xf32>
    %138 = arith.addf %137, %136 : vector<2x48xf32>
    %139 = arith.divf %137, %138 : vector<2x48xf32>
    %140 = vector.extract_strided_slice %133 {offsets = [0, 48], sizes = [2, 16], strides = [1, 1]} : vector<2x64xf32> to vector<2x16xf32>
    %141 = math.tanh %140 : vector<2x16xf32>
    %142 = vector.extract_strided_slice %139 {offsets = [0, 0], sizes = [2, 16], strides = [1, 1]} : vector<2x48xf32> to vector<2x16xf32>
    %143 = vector.extract_strided_slice %139 {offsets = [0, 16], sizes = [2, 16], strides = [1, 1]} : vector<2x48xf32> to vector<2x16xf32>
    %144 = vector.extract_strided_slice %139 {offsets = [0, 32], sizes = [2, 16], strides = [1, 1]} : vector<2x48xf32> to vector<2x16xf32>
    %145 = arith.mulf %143, %127 : vector<2x16xf32>
    %146 = arith.mulf %142, %141 : vector<2x16xf32>
    %147 = arith.addf %145, %146 : vector<2x16xf32>
    %148 = math.tanh %147 : vector<2x16xf32>
    %149 = arith.mulf %144, %148 : vector<2x16xf32>
    %c0_26 = arith.constant 0 : index
    %c0_27 = arith.constant 0 : index
    %150 = vector.load %arg5[%c0_26, %c0_27] : memref<16x1xf32, #tpu.memory_space<vmem>>, vector<16x1xf32>
    %cst_28 = arith.constant dense<0.000000e+00> : vector<2x1xf32>
    %151 = tpu.matmul %149, %150, %cst_28 {dimension_numbers = #tpu.dot_dimension_numbers<[1], [0], [0], [1], [0, 0, 1, 1], [], []>} : vector<2x16xf32>, vector<16x1xf32>, vector<2x1xf32> -> vector<2x1xf32>
    %c0_29 = arith.constant 0 : index
    %c0_30 = arith.constant 0 : index
    %152 = vector.load %arg6[%c0_29, %c0_30] : memref<1x1xf32, #tpu.memory_space<vmem>>, vector<1x1xf32>
    %153 = vector.broadcast %152 : vector<1x1xf32> to vector<2x1xf32>
    %154 = arith.addf %151, %153 : vector<2x1xf32>
    %c0_31 = arith.constant 0 : index
    %c0_32 = arith.constant 0 : index
    %155 = vector.load %arg9[%c0_31, %c0_32] : memref<2x1xf32, #tpu.memory_space<vmem>>, vector<2x1xf32>
    tpu.vector_store %arg9[%c0_31, %c0_32], %154 {strides = array<i32>} : memref<2x1xf32, #tpu.memory_space<vmem>>, vector<2x1xf32>,
    return
  }
  func.func @transform_0(%arg0: i32) -> (i32, i32, i32) {
    %c0_i32 = arith.constant 0 : i32
    %c0_i32_0 = arith.constant 0 : i32
    %c0_i32_1 = arith.constant 0 : i32
    return %arg0, %c0_i32, %c0_i32_0 : i32, i32, i32
  }
  func.func @transform_1(%arg0: i32) -> (i32, i32) {
    %c0_i32 = arith.constant 0 : i32
    %c0_i32_0 = arith.constant 0 : i32
    %c0_i32_1 = arith.constant 0 : i32
    return %c0_i32, %c0_i32_0 : i32, i32
  }
  func.func @transform_2(%arg0: i32) -> (i32, i32) {
    %c0_i32 = arith.constant 0 : i32
    %c0_i32_0 = arith.constant 0 : i32
    %c0_i32_1 = arith.constant 0 : i32
    return %c0_i32, %c0_i32_0 : i32, i32
  }
  func.func @transform_3(%arg0: i32) -> (i32, i32) {
    %c0_i32 = arith.constant 0 : i32
    %c0_i32_0 = arith.constant 0 : i32
    %c0_i32_1 = arith.constant 0 : i32
    return %c0_i32, %c0_i32_0 : i32, i32
  }
  func.func @transform_4(%arg0: i32) -> (i32, i32) {
    %c0_i32 = arith.constant 0 : i32
    %c0_i32_0 = arith.constant 0 : i32
    %c0_i32_1 = arith.constant 0 : i32
    return %c0_i32, %c0_i32_0 : i32, i32
  }
  func.func @transform_5(%arg0: i32) -> (i32, i32) {
    %c0_i32 = arith.constant 0 : i32
    %c0_i32_0 = arith.constant 0 : i32
    %c0_i32_1 = arith.constant 0 : i32
    return %c0_i32, %c0_i32_0 : i32, i32
  }
  func.func @transform_6(%arg0: i32) -> (i32, i32) {
    %c0_i32 = arith.constant 0 : i32
    %c0_i32_0 = arith.constant 0 : i32
    return %arg0, %c0_i32 : i32, i32
  }
  func.func @transform_7(%arg0: i32) -> (i32, i32) {
    %c0_i32 = arith.constant 0 : i32
    %c0_i32_0 = arith.constant 0 : i32
    return %arg0, %c0_i32 : i32, i32
  }
  func.func @transform_8(%arg0: i32) -> (i32, i32) {
    %c0_i32 = arith.constant 0 : i32
    %c0_i32_0 = arith.constant 0 : i32
    return %arg0, %c0_i32 : i32, i32
  }
}

</mosaic_0001>

<bundles_post_ra>
// kernel: co_lstm_forward.1
= control target key start
LH: loop header
LB: loop body
LE: loop exit
PB: predicated region body
PF: predicated region fallthrough
CT: control target
= control target key end

     0   :  { %v49_v0 = vlaneseq  ;;  %v2111_v4 = vmov 1966171168   ;;  %v2112_v6 = vmov 0.0|0.0   ;;  %vm2113_vm0 = vmmov 0   ;;  %s2117_s19 = smov 96   ;;  %s2481_s1 = inlined_call_operand.vmem [shape: f32[16,64], index: 1, kind: input, shape index: {}]   ;;  %s2482_s0 = inlined_call_operand.vmem [shape: f32[2,7,16], index: 0, kind: input, shape index: {}]   ;;  %s2483_s2 = inlined_call_operand.vmem [shape: f32[16,64], index: 2, kind: input, shape index: {}]   ;;  %s2484_s7 = inlined_call_operand.vmem [shape: f32[2,16], index: 7, kind: input, shape index: {}]   ;;  %s2485_s6 = inlined_call_operand.vmem [shape: f32[2,16], index: 6, kind: input, shape index: {}]   ;;  %s2486_s3 = inlined_call_operand.vmem [shape: f32[1,64], index: 3, kind: input, shape index: {}]   ;;  %s2487_s4 = inlined_call_operand.vmem [shape: f32[16,1], index: 4, kind: input, shape index: {}]   ;;  %s2488_s5 = inlined_call_operand.<no memory space> [shape: f32[1,1], index: 5, kind: input, shape index: {}]   ;;  %s2489_s8 = inlined_call_operand.vmem [shape: f32[2,1], index: 8, kind: output, shape index: {}]  }
   0x1   :  { %v35_v1 = vld [vmem:[%s2481_s1] sm:$0xff]  ;;  %v36_v2 = vld [vmem:[%s2481_s1 + $0x8] sm:$0xff]  ;;  %v47_v5 = vunpack.c.l.s4 %v2111_v4  ;;  %1966 = vmatprep.subr.bf16.mxu1 %v2112_v6  ;;  %v2114_v12 = vmov 0.0   ;;  %vm369_vm1 = vcmask 130048   ;;  %vm1836_vm2 = vcmask 1024  }
   0x2   :  { %v31_v3 = vld [vmem:[%s2482_s0] sm:$0x7f]  ;;  %v1962_v7 = vpack.c.bf16 %v36_v2, %v35_v1  ;;  %v32_v8 = vld [vmem:[%s2482_s0 + $0x8] sm:$0x7f]  ;;  %v50_v9 = vshrl.u32 %v49_v0, 7  ;;  %1910 = vmatprep.mubr.msk.f32.mxu1 %vm2113_vm0, %v2114_v12 }
   0x3   :  { %v33_v10 = vld [vmem:[%s2483_s2] sm:$0xff]  ;;  %v34_v11 = vld [vmem:[%s2483_s2 + $0x8] sm:$0xff]  ;;  %v45_v13 = vcombine.high %v31_v3, %v31_v3  ;;  %v48_v14 = vunpack.c.0.s8 %v47_v5  ;;  %v93_v15 = vcombine.high %v32_v8, %v32_v8 }
   0x4   :  { %v2184_v16 = vpack.c.bf16 %v34_v11, %v33_v10  ;;  %v1850_v17 = vld.sshfl [vmem:[%s2484_s7] sm:$0x11 pattern:$0x75316420]  ;;  %1963 = vmatprep.subr.bf16.mxu0 %v1962_v7 }
   0x5   :  { %v685_v18 = vcombine.high %v1850_v17, %v1850_v17  ;;  %1965 = vmatpush3.bf16.msra.mxu0 %v1962_v7  ;;  %v2189_v19 = vsub.s32 %v48_v14, %v50_v9  ;;  %v561_v20 = vld [vmem:[%s2485_s6] sm:$0x3]  ;;  %s2115_s6 = smov 16  }
   0x6   :  { %1968 = vmatpush3.bf16.msra.mxu1 %v2184_v16  ;;  %1969 = vmatprep.subr.bf16.mxu0 %v2112_v6  ;;  %v1842_v2 = vld [vmem:[%s2486_s3] ss:$0 sm:$0xff]  ;;  %s2116_s3 = smov 80  }
   0x7   :  { %1972 = vmatprep.subr.bf16.mxu1 %v2112_v6  ;;  %v52_v21 = vrot.slane %v31_v3, %v2189_v19  ;;  %v59_v22 = vrot.slane %v45_v13, %v2189_v19  ;;  %v100_v23 = vrot.slane %v32_v8, %v2189_v19  ;;  %v107_v24 = vrot.slane %v93_v15, %v2189_v19 }
   0x8   :  { %v692_v25 = vrot.slane %v1850_v17, %v2189_v19  ;;  %v699_v26 = vrot.slane %v685_v18, %v2189_v19  ;;  %v141_v3 = vcombine.high %v1842_v2, %v1842_v2  ;;  %v148_v5 = vrot.slane %v1842_v2, %v2189_v19 }
   0x9   :  { %1911 = vmatmul.mubr.msk.f32.vlgmr.msra.gmra.mrb[0].mxu1 %vm369_vm1, %v561_v20  ;;  %v60_v27 = vcombine.high %v52_v21, %v52_v21  ;;  %v61_v28 = vcombine.high %v59_v22, %v59_v22  ;;  %v68_v29 = vrot.slane %v52_v21, %v2189_v19  ;;  %v75_v30 = vrot.slane %v59_v22, %v2189_v19 }
   0xa   :  { %1974 = vmatpush3.bf16.msra.mxu1 %v2184_v16  ;;  %v108_v31 = vcombine.high %v100_v23, %v100_v23  ;;  %v116_v32 = vrot.slane %v100_v23, %v2189_v19  ;;  %v109_v33 = vcombine.high %v107_v24, %v107_v24  ;;  %v123_v34 = vrot.slane %v107_v24, %v2189_v19 }
   0xb   :  { %700 = vrot.lane.b32.xlu1 %v692_v25, %s2115_s6  ;;  %v82_v35 = vrot.slane %v60_v27, %v2189_v19  ;;  %v89_v36 = vrot.slane %v61_v28, %v2189_v19  ;;  %v91_v37 = vcombine.high %v75_v30, %v75_v30  ;;  %1924 = vmatprep.mubr.msk.f32.mxu1 %vm2113_vm0, %v2114_v12 }
   0xc   :  { %v138_v38 = vcombine.high %v116_v32, %v116_v32  ;;  %v130_v39 = vrot.slane %v108_v31, %v2189_v19  ;;  %v137_v40 = vrot.slane %v109_v33, %v2189_v19  ;;  %v139_v41 = vcombine.high %v123_v34, %v123_v34  ;;  %1978 = vmatprep.subr.bf16.mxu1 %v2112_v6 }
   0xd   :  { %v189_v42 = vcombine.low %v68_v29, %v82_v35  ;;  %v1843_v43 = vcombine.high %v68_v29, %v82_v35  ;;  %v191_v44 = vcombine.low %v75_v30, %v89_v36  ;;  %v192_v45 = vcombine.low %v91_v37, %v116_v32 }
   0xe   :  { %v140_v46 = vcombine.high %v130_v39, %v130_v39  ;;  %v238_v47 = vcombine.low %v130_v39, %v138_v38  ;;  %v240_v48 = vcombine.low %v137_v40, %v139_v41  ;;  %v155_v4 = vrot.slane %v141_v3, %v2189_v19 }
   0xf   :  { %702 = vrot.lane.b32.xlu1 %v699_v26, %s2115_s6  ;;  %v199_v49 = vrot.slane %v189_v42, %v2189_v19  ;;  %v206_v50 = vrot.slane %v1843_v43, %v2189_v19  ;;  %v213_v51 = vrot.slane %v191_v44, %v2189_v19  ;;  %v220_v52 = vrot.slane %v192_v45, %v2189_v19 }
  0x10   :  { %v239_v53 = vcombine.low %v140_v46, %v123_v34  ;;  %v247_v54 = vrot.slane %v238_v47, %v2189_v19  ;;  %v261_v55 = vrot.slane %v240_v48, %v2189_v19  ;;  %v157_v7 = vcombine.high %v155_v4, %v155_v4 }
  0x11   :  { %v221_v56 = vcombine.low %v199_v49, %v206_v50  ;;  %v222_v57 = vcombine.low %v213_v51, %v220_v52  ;;  %v2241_v8 = vrot.slane %v155_v4, %v2189_v19  ;;  %v156_v9 = vcombine.high %v148_v5, %v148_v5 }
  0x12   :  { %v254_v58 = vrot.slane %v239_v53, %v2189_v19  ;;  %v276_v62 = vrot.slane %v261_v55, %v2189_v19  ;;  %v2244_v10 = vrot.slane %v157_v7, %v2189_v19  ;;  %v2251_v13 = vrot.slane %v148_v5, %v2189_v19 }
  0x13   :  { %v229_v59 = vrot.slane %v221_v56, %v2189_v19  ;;  %v236_v60 = vrot.slane %v222_v57, %v2189_v19  ;;  %v2248_v11 = vcombine.high %v2241_v8, %v2241_v8  ;;  %v2254_v14 = vrot.slane %v156_v9, %v2189_v19 }
  0x14   :  { %v262_v61 = vcombine.low %v247_v54, %v254_v58  ;;  %v280_v18 = vcombine.low %v2241_v8, %v2244_v10 }
  0x15   :  { %v237_v63 = vcombine.low %v229_v59, %v236_v60  ;;  %v278_v15 = vcombine.low %v2251_v13, %v2254_v14  ;;  %v1844_v17 = vcombine.high %v2251_v13, %v2254_v14  ;;  %v281_v20 = vcombine.low %v2248_v11, %v2251_v13 }
  0x16   :  { %v269_v0 = vrot.slane %v262_v61, %v2189_v19  ;;  %v302_v25 = vrot.slane %v280_v18, %v2189_v19 }
  0x17   :  { %1903 = vmatprep.mubr.msk.f32.mxu0 %vm369_vm1, %v237_v63  ;;  %v288_v23 = vrot.slane %v278_v15, %v2189_v19  ;;  %v295_v24 = vrot.slane %v1844_v17, %v2189_v19  ;;  %v309_v26 = vrot.slane %v281_v20, %v2189_v19 }
  0x18   :  { %v277_v1 = vcombine.low %v269_v0, %v276_v62 }
  0x19   :  { %v310_v27 = vcombine.low %v288_v23, %v295_v24  ;;  %v311_v28 = vcombine.low %v302_v25, %v309_v26  ;;  %v186_v25 = vcombine.high %v2251_v13, %v2251_v13  ;;  %v188_v26 = vcombine.high %v2254_v14, %v2254_v14 }
  0x1a   :  { %1904 = vmatmul.mubr.msk.f32.vlgmr.msra.gmra.mrb[0].mxu0 %vm369_vm1, %v277_v1 }
  0x1b   :  { %1971 = vmatpush3.bf16.msra.mxu0 %v2184_v16  ;;  %1917 = vmatprep.mubr.msk.f32.mxu0 %vm2113_vm0, %v2114_v12  ;;  %v318_v29 = vrot.slane %v310_v27, %v2189_v19  ;;  %v325_v30 = vrot.slane %v311_v28, %v2189_v19  ;;  %v327_v27 = vcombine.low %v2254_v14, %v186_v25 }
  0x1c   :  { %1975 = vmatprep.subr.bf16.mxu0 %v2112_v6  ;;  %v328_v28 = vcombine.low %v188_v26, %v2241_v8 }
  0x1d   :  { %v326_v31 = vcombine.low %v318_v29, %v325_v30  ;;  %v329_v29 = vcombine.low %v2244_v10, %v2248_v11  ;;  %v336_v30 = vrot.slane %v327_v27, %v2189_v19 }
  0x7d   :  { %v701_v62 = vpop.permute.xlu1 %700 }
  0x81   :  { %v703_v2 = vpop.permute.xlu1 %702 }
  0xdc   :  { %v632_v21 = vpop.f32.mrb[0].mxu1 }
  0xdd   :  { %v1912_v22 = vpop.f32.mrb[1].mxu1  ;;  %v643_v33 = vrot.slane %v632_v21, %v2189_v19 }
  0xdf   :  { %v651_v38 = vrot.slane %v643_v33, %v2189_v19  ;;  %v644_v42 = vcombine.high %v643_v33, %v643_v33  ;;  %v350_v33 = vrot.slane %v329_v29, %v2189_v19 }
  0xe1   :  { %v658_v46 = vrot.slane %v644_v42, %v2189_v19  ;;  %v365_v13 = vrot.slane %v350_v33, %v2189_v19 }
  0xed   :  { %v2270_v32 = vpop.f32.mrb[0].mxu0 }
  0xee   :  { %v440_v34 = vpop.f32.mrb[1].mxu0 }
  0xef   :  { %v441_v35 = vadd.f32 %v440_v34, %v326_v31  ;;  %v343_v31 = vrot.slane %v328_v28, %v2189_v19 }
  0xf1   :  { %v451_v36 = vcombine.high %v441_v35, %v441_v35  ;;  %v2274_v37 = vrot.slane %v441_v35, %v2189_v19  ;;  %v351_v34 = vcombine.low %v336_v30, %v343_v31 }
  0xf3   :  { %v2278_v39 = vrot.slane %v451_v36, %v2189_v19  ;;  %v2282_v40 = vrot.slane %v2274_v37, %v2189_v19  ;;  %v358_v35 = vrot.slane %v351_v34, %v2189_v19  ;;  %v466_v8 = vcombine.high %v2274_v37, %v2274_v37 }
  0xf5   :  { %v467_v41 = vcombine.high %v2278_v39, %v2278_v39  ;;  %v661_v43 = vadd.f32 %v651_v38, %v2282_v40  ;;  %v366_v36 = vcombine.low %v358_v35, %v365_v13  ;;  %v2337_v42 = vrot.slane %v466_v8, %v2189_v19 }
  0xf6   :  { %v496_v27 = vcombine.high %v2282_v40, %v2282_v40 }
  0xf7   :  { %v2288_v44 = vrot.slane %v467_v41, %v2189_v19  ;;  %1999 = vtanh.f32 %v661_v43  ;;  %v1848_v50 = vmul.f32 -1.442695, %v661_v43  ;;  %v2327_v38 = vadd.f32 %v2270_v32, %v366_v36 }
  0xf9   :  { %v499_v45 = vcombine.high %v2288_v44, %v2288_v44  ;;  %v2333_v10 = vrot.slane %v2327_v38, %v2189_v19 }
  0xfb   :  { %v662_v47 = vadd.f32 %v658_v46, %v499_v45  ;;  %v2342_v32 = vrot.slane %v2333_v10, %v2189_v19 }
  0xfd   :  { %2001 = vtanh.f32 %v662_v47  ;;  %v1849_v51 = vmul.f32 -1.442695, %v662_v47 }
  0xfe   :  { %2003 = vpow2.f32 %v1848_v50 }
  0xff   :  { %2005 = vpow2.f32 %v1849_v51 }
 0x101   :  { %v2000_v48 = vpop.eup %1999 }
 0x102   :  { %710 = vrot.lane.b32.xlu0 %v2000_v48, %s2116_s3 }
 0x107   :  { %v2002_v49 = vpop.eup %2001 }
 0x108   :  { %712 = vrot.lane.b32.xlu0 %v2002_v49, %s2116_s3  ;;  %v2004_v52 = vpop.eup %2003 }
 0x109   :  { %v669_v53 = vadd.f32 1.0, %v2004_v52  ;;  %v2006_v54 = vpop.eup %2005 }
 0x10a   :  { %v670_v55 = vadd.f32 1.0, %v2006_v54 }
 0x10b   :  { %2007 = vrcp.f32 %v669_v53 }
 0x10c   :  { %2009 = vrcp.f32 %v670_v55 }
 0x115   :  { %v2008_v56 = vpop.eup %2007 }
 0x116   :  { %v2010_v59 = vpop.eup %2009  ;;  %v706_v63 = vmul.f32 %v2008_v56, %v701_v62 }
 0x117   :  { %v707_v3 = vmul.f32 %v2010_v59, %v703_v2 }
 0x174   :  { %v711_v57 = vpop.permute.xlu0 %710 }
 0x175   :  { %v716_v58 = vmul.f32 %v2008_v56, %v711_v57 }
 0x177   :  { %720 = vrot.lane.b32.xlu0 %v716_v58, %s2115_s6 }
 0x17a   :  { %v713_v60 = vpop.permute.xlu0 %712 }
 0x17b   :  { %v717_v61 = vmul.f32 %v2010_v59, %v713_v60 }
 0x17d   :  { %722 = vrot.lane.b32.xlu1 %v717_v61, %s2115_s6 }
 0x1e9   :  { %v721_v0 = vpop.permute.xlu0 %720 }
 0x1ea   :  { %v2297_v1 = vadd.f32 %v721_v0, %v706_v63 }
 0x1ec   :  { %2011 = vtanh.f32 %v2297_v1 }
 0x1ef   :  { %v723_v4 = vpop.permute.xlu1 %722 }
 0x1f0   :  { %v2300_v5 = vadd.f32 %v723_v4, %v707_v3 }
 0x1f2   :  { %2013 = vtanh.f32 %v2300_v5 }
 0x1f6   :  { %v2012_v7 = vpop.eup %2011 }
 0x1f7   :  { %732 = vrot.lane.b32.xlu0 %v2012_v7, %s2115_s6 }
 0x1fc   :  { %v2014_v9 = vpop.eup %2013 }
 0x1fd   :  { %734 = vrot.lane.b32.xlu1 %v2014_v9, %s2115_s6 }
 0x269   :  { %v733_v15 = vpop.permute.xlu0 %732 }
 0x26a   :  { %v738_v18 = vmul.f32 %v2008_v56, %v733_v15 }
 0x26f   :  { %v735_v17 = vpop.permute.xlu1 %734 }
 0x270   :  { %v739_v20 = vmul.f32 %v2010_v59, %v735_v17 }
 0x272   :  { %v742_v21 = vcombine.low %v738_v18, %v739_v20 }
 0x274   :  { %v749_v22 = vrot.slane %v742_v21, %v2189_v19 }
 0x276   :  { %v756_v23 = vrot.slane %v749_v22, %v2189_v19 }
 0x278   :  { %757 = vrot.lane.b32.xlu0 %v756_v23, %s2117_s19 }
 0x2ea   :  { %v758_v24 = vpop.permute.xlu0 %757 }
 0x2eb   :  { %1918 = vmatmul.mubr.msk.f32.vlgmr.msra.gmra.mrb[2].mxu0 %vm369_vm1, %v758_v24  ;;  %v515_v24 = vcombine.high %v2333_v10, %v2333_v10 }
 0x2ec   :  { %1977 = vmatpush3.bf16.msra.mxu0 %v2184_v16  ;;  %1931 = vmatprep.mubr.msk.f32.mxu0 %vm2113_vm0, %v2114_v12 }
 0x2ed   :  { %1981 = vmatprep.subr.bf16.mxu0 %v2112_v6  ;;  %v2370_v30 = vrot.slane %v515_v24, %v2189_v19 }
 0x3be   :  { %v827_v14 = vpop.f32.mrb[2].mxu0 }
 0x3bf   :  { %v838_v11 = vrot.slane %v827_v14, %v2189_v19  ;;  %v1919_v41 = vpop.f32.mrb[3].mxu0 }
 0x3c1   :  { %v839_v43 = vcombine.high %v838_v11, %v838_v11  ;;  %v846_v45 = vrot.slane %v838_v11, %v2189_v19 }
 0x3c3   :  { %v853_v37 = vrot.slane %v839_v43, %v2189_v19  ;;  %v856_v46 = vadd.f32 %v846_v45, %v2337_v42 }
 0x3c5   :  { %v857_v47 = vadd.f32 %v853_v37, %v2342_v32  ;;  %2015 = vtanh.f32 %v856_v46  ;;  %v1852_v50 = vmul.f32 -1.442695, %v856_v46 }
 0x3c7   :  { %2017 = vtanh.f32 %v857_v47  ;;  %v1853_v51 = vmul.f32 -1.442695, %v857_v47 }
 0x3c8   :  { %2019 = vpow2.f32 %v1852_v50 }
 0x3c9   :  { %2021 = vpow2.f32 %v1853_v51 }
 0x3cf   :  { %v2016_v48 = vpop.eup %2015 }
 0x3d0   :  { %876 = vrot.lane.b32.xlu1 %v2016_v48, %s2116_s3 }
 0x3d1   :  { %v2018_v49 = vpop.eup %2017 }
 0x3d2   :  { %878 = vrot.lane.b32.xlu0 %v2018_v49, %s2116_s3  ;;  %v2020_v52 = vpop.eup %2019 }
 0x3d3   :  { %v2022_v53 = vpop.eup %2021  ;;  %v864_v54 = vadd.f32 1.0, %v2020_v52 }
 0x3d4   :  { %v865_v55 = vadd.f32 1.0, %v2022_v53 }
 0x3d5   :  { %2023 = vrcp.f32 %v864_v54 }
 0x3d6   :  { %2025 = vrcp.f32 %v865_v55 }
 0x3df   :  { %v2024_v56 = vpop.eup %2023 }
 0x3e0   :  { %v2026_v59 = vpop.eup %2025  ;;  %v872_v62 = vmul.f32 %v2024_v56, %v2297_v1 }
 0x3e1   :  { %v873_v2 = vmul.f32 %v2026_v59, %v2300_v5 }
 0x442   :  { %v877_v57 = vpop.permute.xlu1 %876 }
 0x443   :  { %v882_v58 = vmul.f32 %v2024_v56, %v877_v57 }
 0x444   :  { %v879_v60 = vpop.permute.xlu0 %878 }
 0x445   :  { %886 = vrot.lane.b32.xlu1 %v882_v58, %s2115_s6  ;;  %v883_v61 = vmul.f32 %v2026_v59, %v879_v60 }
 0x447   :  { %888 = vrot.lane.b32.xlu0 %v883_v61, %s2115_s6 }
 0x4b7   :  { %v887_v63 = vpop.permute.xlu1 %886 }
 0x4b8   :  { %v892_v0 = vadd.f32 %v887_v63, %v872_v62 }
 0x4b9   :  { %v889_v3 = vpop.permute.xlu0 %888 }
 0x4ba   :  { %2027 = vtanh.f32 %v892_v0  ;;  %v893_v4 = vadd.f32 %v889_v3, %v873_v2 }
 0x4bc   :  { %2029 = vtanh.f32 %v893_v4 }
 0x4c4   :  { %v2028_v7 = vpop.eup %2027 }
 0x4c5   :  { %898 = vrot.lane.b32.xlu1 %v2028_v7, %s2115_s6 }
 0x4c6   :  { %v2030_v9 = vpop.eup %2029 }
 0x4c7   :  { %900 = vrot.lane.b32.xlu0 %v2030_v9, %s2115_s6 }
 0x537   :  { %v899_v15 = vpop.permute.xlu1 %898 }
 0x538   :  { %v904_v18 = vmul.f32 %v2024_v56, %v899_v15  ;;  %v545_v15 = vcombine.high %v2342_v32, %v2342_v32 }
 0x539   :  { %v901_v17 = vpop.permute.xlu0 %900 }
 0x53a   :  { %v905_v20 = vmul.f32 %v2026_v59, %v901_v17 }
 0x53c   :  { %v908_v21 = vcombine.low %v904_v18, %v905_v20 }
 0x53e   :  { %v915_v1 = vrot.slane %v908_v21, %v2189_v19 }
 0x540   :  { %v922_v22 = vrot.slane %v915_v1, %v2189_v19 }
 0x542   :  { %923 = vrot.lane.b32.xlu1 %v922_v22, %s2117_s19 }
 0x5b4   :  { %v924_v5 = vpop.permute.xlu1 %923 }
 0x5b5   :  { %1925 = vmatmul.mubr.msk.f32.vlgmr.msra.gmra.mrb[2].mxu1 %vm369_vm1, %v924_v5 }
 0x5b6   :  { %1980 = vmatpush3.bf16.msra.mxu1 %v2184_v16  ;;  %1938 = vmatprep.mubr.msk.f32.mxu1 %vm2113_vm0, %v2114_v12 }
 0x5b7   :  { %1984 = vmatprep.subr.bf16.mxu1 %v2112_v6 }
 0x688   :  { %v993_v23 = vpop.f32.mrb[2].mxu1 }
 0x689   :  { %v1004_v25 = vrot.slane %v993_v23, %v2189_v19  ;;  %v1926_v26 = vpop.f32.mrb[3].mxu1 }
 0x68b   :  { %v1005_v28 = vcombine.high %v1004_v25, %v1004_v25  ;;  %v1012_v29 = vrot.slane %v1004_v25, %v2189_v19 }
 0x68d   :  { %v1019_v31 = vrot.slane %v1005_v28, %v2189_v19  ;;  %v1022_v33 = vadd.f32 %v1012_v29, %v496_v27 }
 0x68f   :  { %v1023_v34 = vadd.f32 %v1019_v31, %v2370_v30  ;;  %2031 = vtanh.f32 %v1022_v33  ;;  %v1855_v40 = vmul.f32 -1.442695, %v1022_v33 }
 0x691   :  { %2033 = vtanh.f32 %v1023_v34  ;;  %v1856_v36 = vmul.f32 -1.442695, %v1023_v34 }
 0x692   :  { %2035 = vpow2.f32 %v1855_v40 }
 0x693   :  { %2037 = vpow2.f32 %v1856_v36 }
 0x699   :  { %v2032_v35 = vpop.eup %2031 }
 0x69a   :  { %1042 = vrot.lane.b32.xlu0 %v2032_v35, %s2116_s3 }
 0x69b   :  { %v2034_v13 = vpop.eup %2033 }
 0x69c   :  { %1044 = vrot.lane.b32.xlu1 %v2034_v13, %s2116_s3  ;;  %v2036_v8 = vpop.eup %2035 }
 0x69d   :  { %v2038_v14 = vpop.eup %2037  ;;  %v1030_v10 = vadd.f32 1.0, %v2036_v8 }
 0x69e   :  { %v1031_v11 = vadd.f32 1.0, %v2038_v14 }
 0x69f   :  { %2039 = vrcp.f32 %v1030_v10 }
 0x6a0   :  { %2041 = vrcp.f32 %v1031_v11 }
 0x6a9   :  { %v2040_v41 = vpop.eup %2039 }
 0x6aa   :  { %v2042_v37 = vpop.eup %2041  ;;  %v1038_v48 = vmul.f32 %v2040_v41, %v892_v0 }
 0x6ab   :  { %v1039_v51 = vmul.f32 %v2042_v37, %v893_v4  ;;  %v498_v4 = vcombine.high %v2337_v42, %v2337_v42 }
 0x70c   :  { %v1043_v43 = vpop.permute.xlu0 %1042 }
 0x70d   :  { %v1048_v45 = vmul.f32 %v2040_v41, %v1043_v43 }
 0x70e   :  { %v1045_v46 = vpop.permute.xlu1 %1044 }
 0x70f   :  { %1052 = vrot.lane.b32.xlu0 %v1048_v45, %s2115_s6  ;;  %v1049_v47 = vmul.f32 %v2042_v37, %v1045_v46 }
 0x711   :  { %1054 = vrot.lane.b32.xlu1 %v1049_v47, %s2115_s6 }
 0x781   :  { %v1053_v49 = vpop.permute.xlu0 %1052 }
 0x782   :  { %v1058_v50 = vadd.f32 %v1053_v49, %v1038_v48 }
 0x783   :  { %v1055_v52 = vpop.permute.xlu1 %1054 }
 0x784   :  { %2043 = vtanh.f32 %v1058_v50  ;;  %v1059_v53 = vadd.f32 %v1055_v52, %v1039_v51 }
 0x786   :  { %2045 = vtanh.f32 %v1059_v53 }
 0x78e   :  { %v2044_v54 = vpop.eup %2043 }
 0x78f   :  { %1064 = vrot.lane.b32.xlu0 %v2044_v54, %s2115_s6 }
 0x790   :  { %v2046_v55 = vpop.eup %2045 }
 0x791   :  { %1066 = vrot.lane.b32.xlu1 %v2046_v55, %s2115_s6 }
 0x801   :  { %v1065_v56 = vpop.permute.xlu0 %1064 }
 0x802   :  { %v1070_v58 = vmul.f32 %v2040_v41, %v1065_v56 }
 0x803   :  { %v1067_v57 = vpop.permute.xlu1 %1066 }
 0x804   :  { %v1071_v59 = vmul.f32 %v2042_v37, %v1067_v57 }
 0x806   :  { %v1074_v60 = vcombine.low %v1070_v58, %v1071_v59 }
 0x808   :  { %v1081_v61 = vrot.slane %v1074_v60, %v2189_v19 }
 0x80a   :  { %v1088_v62 = vrot.slane %v1081_v61, %v2189_v19 }
 0x80c   :  { %1089 = vrot.lane.b32.xlu0 %v1088_v62, %s2117_s19 }
 0x87e   :  { %v1090_v63 = vpop.permute.xlu0 %1089 }
 0x87f   :  { %1932 = vmatmul.mubr.msk.f32.vlgmr.msra.gmra.mrb[4].mxu0 %vm369_vm1, %v1090_v63 }
 0x880   :  { %1983 = vmatpush3.bf16.msra.mxu0 %v2184_v16  ;;  %1945 = vmatprep.mubr.msk.f32.mxu0 %vm2113_vm0, %v2114_v12 }
 0x881   :  { %1987 = vmatprep.subr.bf16.mxu0 %v2112_v6 }
 0x952   :  { %v1159_v0 = vpop.f32.mrb[4].mxu0 }
 0x953   :  { %v1170_v2 = vrot.slane %v1159_v0, %v2189_v19  ;;  %v1933_v3 = vpop.f32.mrb[5].mxu0 }
 0x955   :  { %v1171_v7 = vcombine.high %v1170_v2, %v1170_v2  ;;  %v1178_v9 = vrot.slane %v1170_v2, %v2189_v19 }
 0x957   :  { %v1185_v17 = vrot.slane %v1171_v7, %v2189_v19  ;;  %v1188_v18 = vadd.f32 %v1178_v9, %v498_v4 }
 0x959   :  { %v1189_v20 = vadd.f32 %v1185_v17, %v545_v15  ;;  %2047 = vtanh.f32 %v1188_v18  ;;  %v1858_v1 = vmul.f32 -1.442695, %v1188_v18 }
 0x95b   :  { %2049 = vtanh.f32 %v1189_v20  ;;  %v1859_v42 = vmul.f32 -1.442695, %v1189_v20 }
 0x95c   :  { %2051 = vpow2.f32 %v1858_v1 }
 0x95d   :  { %2053 = vpow2.f32 %v1859_v42 }
 0x963   :  { %v2048_v6 = vpop.eup %2047 }
 0x964   :  { %1208 = vrot.lane.b32.xlu1 %v2048_v6, %s2116_s3 }
 0x965   :  { %v2050_v21 = vpop.eup %2049 }
 0x966   :  { %1210 = vrot.lane.b32.xlu0 %v2050_v21, %s2116_s3  ;;  %v2052_v22 = vpop.eup %2051 }
 0x967   :  { %v2054_v5 = vpop.eup %2053  ;;  %v1196_v23 = vadd.f32 1.0, %v2052_v22 }
 0x968   :  { %v1197_v32 = vadd.f32 1.0, %v2054_v5 }
 0x969   :  { %2055 = vrcp.f32 %v1196_v23 }
 0x96a   :  { %2057 = vrcp.f32 %v1197_v32 }
 0x973   :  { %v2056_v24 = vpop.eup %2055 }
 0x974   :  { %v2058_v27 = vpop.eup %2057  ;;  %v1204_v31 = vmul.f32 %v2056_v24, %v1058_v50  ;;  %v2411_v50 = vrot.slane %v2278_v39, %v2189_v19 }
 0x975   :  { %v1205_v35 = vmul.f32 %v2058_v27, %v1059_v53  ;;  %v546_v53 = vcombine.high %v2370_v30, %v2370_v30 }
 0x9d6   :  { %v1209_v25 = vpop.permute.xlu1 %1208 }
 0x9d7   :  { %v1214_v26 = vmul.f32 %v2056_v24, %v1209_v25 }
 0x9d8   :  { %v1211_v28 = vpop.permute.xlu0 %1210 }
 0x9d9   :  { %1218 = vrot.lane.b32.xlu1 %v1214_v26, %s2115_s6  ;;  %v1215_v29 = vmul.f32 %v2058_v27, %v1211_v28  ;;  %v500_v26 = vcombine.high %v2327_v38, %v2327_v38 }
 0x9db   :  { %1220 = vrot.lane.b32.xlu0 %v1215_v29, %s2115_s6  ;;  %v2433_v28 = vrot.slane %v500_v26, %v2189_v19 }
 0xa4b   :  { %v1219_v33 = vpop.permute.xlu1 %1218 }
 0xa4c   :  { %v1224_v34 = vadd.f32 %v1219_v33, %v1204_v31 }
 0xa4d   :  { %v1221_v13 = vpop.permute.xlu0 %1220 }
 0xa4e   :  { %2059 = vtanh.f32 %v1224_v34  ;;  %v1225_v40 = vadd.f32 %v1221_v13, %v1205_v35  ;;  %v530_v35 = vrot.slane %v2433_v28, %v2189_v19 }
 0xa50   :  { %2061 = vtanh.f32 %v1225_v40 }
 0xa58   :  { %v2060_v36 = vpop.eup %2059 }
 0xa59   :  { %1230 = vrot.lane.b32.xlu1 %v2060_v36, %s2115_s6 }
 0xa5a   :  { %v2062_v8 = vpop.eup %2061 }
 0xa5b   :  { %1232 = vrot.lane.b32.xlu0 %v2062_v8, %s2115_s6 }
 0xacb   :  { %v1231_v14 = vpop.permute.xlu1 %1230 }
 0xacc   :  { %v1236_v11 = vmul.f32 %v2056_v24, %v1231_v14 }
 0xacd   :  { %v1233_v10 = vpop.permute.xlu0 %1232 }
 0xace   :  { %v1237_v41 = vmul.f32 %v2058_v27, %v1233_v10 }
 0xad0   :  { %v1240_v43 = vcombine.low %v1236_v11, %v1237_v41 }
 0xad2   :  { %v1247_v45 = vrot.slane %v1240_v43, %v2189_v19 }
 0xad4   :  { %v1254_v37 = vrot.slane %v1247_v45, %v2189_v19 }
 0xad6   :  { %1255 = vrot.lane.b32.xlu1 %v1254_v37, %s2117_s19 }
 0xb48   :  { %v1256_v46 = vpop.permute.xlu1 %1255 }
 0xb49   :  { %1939 = vmatmul.mubr.msk.f32.vlgmr.msra.gmra.mrb[4].mxu1 %vm369_vm1, %v1256_v46 }
 0xb4a   :  { %1986 = vmatpush3.bf16.msra.mxu1 %v2184_v16  ;;  %1952 = vmatprep.mubr.msk.f32.mxu1 %vm2113_vm0, %v2114_v12 }
 0xc1c   :  { %v1325_v47 = vpop.f32.mrb[4].mxu1 }
 0xc1d   :  { %v1336_v48 = vrot.slane %v1325_v47, %v2189_v19  ;;  %v1940_v49 = vpop.f32.mrb[5].mxu1 }
 0xc1f   :  { %v1337_v51 = vcombine.high %v1336_v48, %v1336_v48  ;;  %v1344_v52 = vrot.slane %v1336_v48, %v2189_v19 }
 0xc21   :  { %v1351_v54 = vrot.slane %v1337_v51, %v2189_v19  ;;  %v1354_v16 = vadd.f32 %v1344_v52, %v2411_v50 }
 0xc23   :  { %v1355_v55 = vadd.f32 %v1351_v54, %v546_v53  ;;  %2063 = vtanh.f32 %v1354_v16  ;;  %v1861_v39 = vmul.f32 -1.442695, %v1354_v16 }
 0xc25   :  { %2065 = vtanh.f32 %v1355_v55  ;;  %v1862_v58 = vmul.f32 -1.442695, %v1355_v55 }
 0xc26   :  { %2067 = vpow2.f32 %v1861_v39 }
 0xc27   :  { %2069 = vpow2.f32 %v1862_v58 }
 0xc2d   :  { %v2064_v56 = vpop.eup %2063 }
 0xc2e   :  { %1374 = vrot.lane.b32.xlu0 %v2064_v56, %s2116_s3 }
 0xc2f   :  { %v2066_v57 = vpop.eup %2065 }
 0xc30   :  { %1376 = vrot.lane.b32.xlu1 %v2066_v57, %s2116_s3  ;;  %v2068_v59 = vpop.eup %2067 }
 0xc31   :  { %v2070_v60 = vpop.eup %2069  ;;  %v1362_v30 = vadd.f32 1.0, %v2068_v59 }
 0xc32   :  { %v1363_v61 = vadd.f32 1.0, %v2070_v60 }
 0xc33   :  { %2071 = vrcp.f32 %v1362_v30 }
 0xc34   :  { %2073 = vrcp.f32 %v1363_v61 }
 0xc3d   :  { %v2072_v62 = vpop.eup %2071 }
 0xc3e   :  { %v2074_v2 = vpop.eup %2073  ;;  %v1370_v7 = vmul.f32 %v2072_v62, %v1224_v34 }
 0xc3f   :  { %v1371_v17 = vmul.f32 %v2074_v2, %v1225_v40 }
 0xca0   :  { %v1375_v63 = vpop.permute.xlu0 %1374 }
 0xca1   :  { %v1380_v0 = vmul.f32 %v2072_v62, %v1375_v63 }
 0xca2   :  { %v1377_v3 = vpop.permute.xlu1 %1376 }
 0xca3   :  { %1384 = vrot.lane.b32.xlu0 %v1380_v0, %s2115_s6  ;;  %v1381_v4 = vmul.f32 %v2074_v2, %v1377_v3  ;;  %v516_v0 = vcombine.high %v2433_v28, %v2433_v28 }
 0xca5   :  { %1386 = vrot.lane.b32.xlu1 %v1381_v4, %s2115_s6  ;;  %v497_v4 = vcombine.high %v2411_v50, %v2411_v50 }
 0xd15   :  { %v1385_v9 = vpop.permute.xlu0 %1384 }
 0xd16   :  { %v1390_v15 = vadd.f32 %v1385_v9, %v1370_v7 }
 0xd17   :  { %v1387_v18 = vpop.permute.xlu1 %1386 }
 0xd18   :  { %2075 = vtanh.f32 %v1390_v15  ;;  %v1391_v20 = vadd.f32 %v1387_v18, %v1371_v17 }
 0xd1a   :  { %2077 = vtanh.f32 %v1391_v20 }
 0xd22   :  { %v2076_v6 = vpop.eup %2075 }
 0xd23   :  { %1396 = vrot.lane.b32.xlu0 %v2076_v6, %s2115_s6 }
 0xd24   :  { %v2078_v21 = vpop.eup %2077 }
 0xd25   :  { %1398 = vrot.lane.b32.xlu1 %v2078_v21, %s2115_s6 }
 0xd95   :  { %v1397_v1 = vpop.permute.xlu0 %1396 }
 0xd96   :  { %v1402_v22 = vmul.f32 %v2072_v62, %v1397_v1 }
 0xd97   :  { %v1399_v42 = vpop.permute.xlu1 %1398 }
 0xd98   :  { %v1403_v5 = vmul.f32 %v2074_v2, %v1399_v42 }
 0xd9a   :  { %v1406_v23 = vcombine.low %v1402_v22, %v1403_v5 }
 0xd9c   :  { %v1413_v32 = vrot.slane %v1406_v23, %v2189_v19 }
 0xd9e   :  { %v1420_v24 = vrot.slane %v1413_v32, %v2189_v19 }
 0xda0   :  { %1421 = vrot.lane.b32.xlu0 %v1420_v24, %s2117_s19 }
 0xe12   :  { %v1422_v25 = vpop.permute.xlu0 %1421 }
 0xe13   :  { %1946 = vmatmul.mubr.msk.f32.vlgmr.msra.gmra.mrb[6].mxu0 %vm369_vm1, %v1422_v25 }
 0xe14   :  { %1959 = vmatprep.mubr.msk.f32.mxu0 %vm2113_vm0, %v2114_v12 }
 0xee6   :  { %v1491_v27 = vpop.f32.mrb[6].mxu0 }
 0xee7   :  { %v1502_v29 = vrot.slane %v1491_v27, %v2189_v19  ;;  %v1947_v31 = vpop.f32.mrb[7].mxu0 }
 0xee9   :  { %v1503_v33 = vcombine.high %v1502_v29, %v1502_v29  ;;  %v1510_v34 = vrot.slane %v1502_v29, %v2189_v19 }
 0xeeb   :  { %v1517_v13 = vrot.slane %v1503_v33, %v2189_v19  ;;  %v1520_v12 = vadd.f32 %v1510_v34, %v2288_v44 }
 0xeed   :  { %v1521_v40 = vadd.f32 %v1517_v13, %v530_v35  ;;  %2079 = vtanh.f32 %v1520_v12  ;;  %v1864_v8 = vmul.f32 -1.442695, %v1520_v12 }
 0xeef   :  { %2081 = vtanh.f32 %v1521_v40  ;;  %v1865_v14 = vmul.f32 -1.442695, %v1521_v40  ;;  %v1736_v40 = vld [vmem:[%s2487_s4] sm:$0xff] }
 0xef0   :  { %2083 = vpow2.f32 %v1864_v8 }
 0xef1   :  { %2085 = vpow2.f32 %v1865_v14  ;;  %v13_v14 = vstv %s2488_s5 }
 0xef2   :  { %14 = vst [vmem:[#allocation2] sm:$0x1] %v13_v14 }
 0xef7   :  { %v2080_v38 = vpop.eup %2079 }
 0xef8   :  { %1540 = vrot.lane.b32.xlu1 %v2080_v38, %s2116_s3  ;;  %v1737_v38 = vld [vmem:[%s2487_s4 + $0x8] sm:$0xff] }
 0xef9   :  { %v2082_v36 = vpop.eup %2081 }
 0xefa   :  { %1542 = vrot.lane.b32.xlu0 %v2082_v36, %s2116_s3  ;;  %v2084_v10 = vpop.eup %2083  ;;  %v1988_v36 = vpack.c.bf16 %v1737_v38, %v1736_v40 }
 0xefb   :  { %v2086_v11 = vpop.eup %2085  ;;  %v1528_v41 = vadd.f32 1.0, %v2084_v10 }
 0xefc   :  { %v1529_v43 = vadd.f32 1.0, %v2086_v11  ;;  %1989 = vmatpush3.bf16.msra.mxu0 %v1988_v36 }
 0xefd   :  { %2087 = vrcp.f32 %v1528_v41 }
 0xefe   :  { %2089 = vrcp.f32 %v1529_v43 }
 0xf07   :  { %v2088_v44 = vpop.eup %2087 }
 0xf08   :  { %v2090_v46 = vpop.eup %2089  ;;  %v1536_v49 = vmul.f32 %v2088_v44, %v1390_v15  ;;  %v544_v15 = vrot.slane %v516_v0, %v2189_v19 }
 0xf09   :  { %v1537_v53 = vmul.f32 %v2090_v46, %v1391_v20 }
 0xf6a   :  { %v1541_v45 = vpop.permute.xlu1 %1540 }
 0xf6b   :  { %v1546_v37 = vmul.f32 %v2088_v44, %v1541_v45 }
 0xf6c   :  { %v1543_v47 = vpop.permute.xlu0 %1542 }
 0xf6d   :  { %1550 = vrot.lane.b32.xlu1 %v1546_v37, %s2115_s6  ;;  %v1547_v48 = vmul.f32 %v2090_v46, %v1543_v47  ;;  %v1869_v47 = vld [vmem:[#allocation2] ss:$0 sm:$0xff] }
 0xf6f   :  { %1552 = vrot.lane.b32.xlu0 %v1547_v48, %s2115_s6 }
 0xfdf   :  { %v1551_v51 = vpop.permute.xlu1 %1550 }
 0xfe0   :  { %v1556_v52 = vadd.f32 %v1551_v51, %v1536_v49 }
 0xfe1   :  { %v1553_v54 = vpop.permute.xlu0 %1552 }
 0xfe2   :  { %2091 = vtanh.f32 %v1556_v52  ;;  %v1557_v16 = vadd.f32 %v1553_v54, %v1537_v53 }
 0xfe4   :  { %2093 = vtanh.f32 %v1557_v16 }
 0xfec   :  { %v2092_v55 = vpop.eup %2091 }
 0xfed   :  { %1562 = vrot.lane.b32.xlu1 %v2092_v55, %s2115_s6 }
 0xfee   :  { %v2094_v56 = vpop.eup %2093 }
 0xfef   :  { %1564 = vrot.lane.b32.xlu0 %v2094_v56, %s2115_s6 }
0x105f   :  { %v1563_v57 = vpop.permute.xlu1 %1562 }
0x1060   :  { %v1568_v58 = vmul.f32 %v2088_v44, %v1563_v57 }
0x1061   :  { %v1565_v39 = vpop.permute.xlu0 %1564 }
0x1062   :  { %v1569_v59 = vmul.f32 %v2090_v46, %v1565_v39 }
0x1064   :  { %v1572_v60 = vcombine.low %v1568_v58, %v1569_v59 }
0x1066   :  { %v1579_v30 = vrot.slane %v1572_v60, %v2189_v19 }
0x1068   :  { %v1586_v61 = vrot.slane %v1579_v30, %v2189_v19 }
0x106a   :  { %1587 = vrot.lane.b32.xlu1 %v1586_v61, %s2117_s19 }
0x10dc   :  { %v1588_v62 = vpop.permute.xlu1 %1587 }
0x10dd   :  { %1953 = vmatmul.mubr.msk.f32.vlgmr.msra.gmra.mrb[6].mxu1 %vm369_vm1, %v1588_v62 }
0x11b0   :  { %v1657_v63 = vpop.f32.mrb[6].mxu1 }
0x11b1   :  { %v1668_v2 = vrot.slane %v1657_v63, %v2189_v19  ;;  %v1954_v3 = vpop.f32.mrb[7].mxu1 }
0x11b3   :  { %v1669_v7 = vcombine.high %v1668_v2, %v1668_v2  ;;  %v1676_v9 = vrot.slane %v1668_v2, %v2189_v19 }
0x11b5   :  { %v1683_v17 = vrot.slane %v1669_v7, %v2189_v19  ;;  %v1686_v18 = vadd.f32 %v1676_v9, %v497_v4 }
0x11b7   :  { %v1687_v20 = vadd.f32 %v1683_v17, %v544_v15  ;;  %2095 = vtanh.f32 %v1686_v18  ;;  %v1867_v1 = vmul.f32 -1.442695, %v1686_v18 }
0x11b9   :  { %2097 = vtanh.f32 %v1687_v20  ;;  %v1868_v42 = vmul.f32 -1.442695, %v1687_v20 }
0x11ba   :  { %2099 = vpow2.f32 %v1867_v1 }
0x11bb   :  { %2101 = vpow2.f32 %v1868_v42 }
0x11c1   :  { %v2096_v6 = vpop.eup %2095 }
0x11c2   :  { %1706 = vrot.lane.b32.xlu0 %v2096_v6, %s2116_s3 }
0x11c3   :  { %v2098_v21 = vpop.eup %2097 }
0x11c4   :  { %1708 = vrot.lane.b32.xlu1 %v2098_v21, %s2116_s3  ;;  %v2100_v50 = vpop.eup %2099 }
0x11c5   :  { %v2102_v22 = vpop.eup %2101  ;;  %v1694_v5 = vadd.f32 1.0, %v2100_v50 }
0x11c6   :  { %v1695_v23 = vadd.f32 1.0, %v2102_v22 }
0x11c7   :  { %2103 = vrcp.f32 %v1694_v5 }
0x11c8   :  { %2105 = vrcp.f32 %v1695_v23 }
0x11d1   :  { %v2104_v32 = vpop.eup %2103 }
0x11d2   :  { %v2106_v26 = vpop.eup %2105  ;;  %v1702_v29 = vmul.f32 %v2104_v32, %v1556_v52 }
0x11d3   :  { %v1703_v34 = vmul.f32 %v2106_v26, %v1557_v16 }
0x1234   :  { %v1707_v24 = vpop.permute.xlu0 %1706 }
0x1235   :  { %v1712_v25 = vmul.f32 %v2104_v32, %v1707_v24 }
0x1236   :  { %v1709_v27 = vpop.permute.xlu1 %1708 }
0x1237   :  { %1716 = vrot.lane.b32.xlu0 %v1712_v25, %s2115_s6  ;;  %v1713_v28 = vmul.f32 %v2106_v26, %v1709_v27 }
0x1239   :  { %1718 = vrot.lane.b32.xlu1 %v1713_v28, %s2115_s6 }
0x12a9   :  { %v1717_v31 = vpop.permute.xlu0 %1716 }
0x12aa   :  { %v1722_v33 = vadd.f32 %v1717_v31, %v1702_v29 }
0x12ab   :  { %v1719_v35 = vpop.permute.xlu1 %1718 }
0x12ac   :  { %2107 = vtanh.f32 %v1722_v33  ;;  %v1723_v13 = vadd.f32 %v1719_v35, %v1703_v34 }
0x12ae   :  { %2109 = vtanh.f32 %v1723_v13 }
0x12b6   :  { %v2108_v12 = vpop.eup %2107 }
0x12b7   :  { %1728 = vrot.lane.b32.xlu0 %v2108_v12, %s2115_s6 }
0x12b8   :  { %v2110_v8 = vpop.eup %2109 }
0x12b9   :  { %1730 = vrot.lane.b32.xlu1 %v2110_v8, %s2115_s6 }
0x1329   :  { %v1729_v10 = vpop.permute.xlu0 %1728 }
0x132a   :  { %v1734_v41 = vmul.f32 %v2104_v32, %v1729_v10 }
0x132b   :  { %v1731_v11 = vpop.permute.xlu1 %1730 }
0x132c   :  { %v1735_v43 = vmul.f32 %v2106_v26, %v1731_v11 }
0x132e   :  { %v1747_v44 = vcombine.low %v1734_v41, %v1735_v43 }
0x1330   :  { %v1754_v45 = vrot.slane %v1747_v44, %v2189_v19 }
0x1332   :  { %v1761_v37 = vrot.slane %v1754_v45, %v2189_v19 }
0x1334   :  { %1762 = vrot.lane.b32.xlu0 %v1761_v37, %s2117_s19 }
0x13a6   :  { %v1763_v46 = vpop.permute.xlu0 %1762 }
0x13a7   :  { %1960 = vmatmul.mubr.msk.f32.vlgmr.msra.gmra.mrb[8].mxu0 %vm369_vm1, %v1763_v46 }
0x147a   :  { %v1832_v48 = vpop.f32.mrb[8].mxu0 }
0x147b   :  { %v1833_v49 = vadd.f32 %v1869_v47, %v1832_v48  ;;  %v1961_v51 = vpop.f32.mrb[9].mxu0 }
0x147d   :  { %1837 = vst.msk [vmem:[%s2489_s8] sm:$0x3] %vm1836_vm2, %v1833_v49 }

</bundles_post_ra>
